<compile_context>
chip_gen: v7x
topology: tpu7x:2x2x1
jax: 0.10.0
libtpu: 0.0.40
codegen_flags: <defaults>
</compile_context>

<pallas_src>
import functools

import jax
import jax.numpy as jnp
from jax.experimental import pallas as pl
from jax.experimental.pallas import tpu as pltpu

_LANES = 128                     # vreg lane width
_CHUNK = 128                     # rows per inner-loop slice (multiple of 8)
_NUM_CORES = 2                   # v7x TensorCores per chip; harmless on 1-TC chips
_TILE_BYTES = 2 * 1024 * 1024    # target per-input tile footprint (native dtype)


def _round_up(x, m):
    return ((x + m - 1) // m) * m


def _choose_block_rows(rows, lanes, itemsize):
    """Rows per grid block.

    Full array when it fits one chunk; otherwise the largest multiple of
    _CHUNK rows whose native-dtype footprint is <= _TILE_BYTES (capped at
    8192 rows so the unrolled inner loop stays short).
    """
    if rows <= _CHUNK:
        return rows                          # rows is always a multiple of 8 here
    cap = _TILE_BYTES // max(1, lanes * itemsize)
    cap = max(_CHUNK, min(8192, (cap // _CHUNK) * _CHUNK))
    return min(cap, (rows // _CHUNK) * _CHUNK)


def _r2_sums_kernel(preds_ref, labels_ref, out_ref, *, total_rows):
    """Accumulate per-lane partial sums of y, y^2 and (y - p)^2.

    out_ref: (3, 8, lanes) f32 block, resident across the inner (arbitrary)
    grid axis: slab 0 = sum(y), slab 1 = sum(y^2), slab 2 = sum((y-p)^2),
    kept as per-sublane partials so the steady-state loop is pure VALU work.
    """
    c = pl.program_id(0)                     # TensorCore (parallel) axis
    i = pl.program_id(1)                     # row-block (arbitrary) axis

    @pl.when(i == 0)
    def _init():
        out_ref[...] = jnp.zeros_like(out_ref)

    block_rows, lanes = preds_ref.shape
    chunk = min(_CHUNK, block_rows)          # block_rows % chunk == 0 by construction
    n_chunks = block_rows // chunk
    g = c * pl.num_programs(1) + i           # global row-block index
    rows_here = total_rows - g * block_rows  # valid rows inside this block

    def accumulate(masked):
        def body(j, carry):
            sy, sy2, se = carry
            r0 = pl.multiple_of(j * chunk, chunk)
            y = labels_ref[pl.ds(r0, chunk), :].astype(jnp.float32)
            p = preds_ref[pl.ds(r0, chunk), :].astype(jnp.float32)
            if masked:                        # only the partial last block pays for this
                row = jax.lax.broadcasted_iota(jnp.int32, (chunk, lanes), 0)
                keep = (r0 + row) < rows_here
                zero = jnp.zeros_like(y)
                y = jnp.where(keep, y, zero)
                p = jnp.where(keep, p, zero)
            # Static 8-row slabs: one vreg each, accumulators stay one vreg.
            for s in range(chunk // 8):
                ys = y[s * 8:(s + 1) * 8, :]
                ps = p[s * 8:(s + 1) * 8, :]
                d = ys - ps
                sy = sy + ys
                sy2 = sy2 + ys * ys
                se = se + d * d
            return sy, sy2, se

        z = jnp.zeros((8, lanes), jnp.float32)
        sy, sy2, se = jax.lax.fori_loop(0, n_chunks, body, (z, z, z),
                                        unroll=min(8, n_chunks))
        out_ref[0] += sy
        out_ref[1] += sy2
        out_ref[2] += se

    @pl.when(rows_here >= block_rows)        # steady state: full block, no mask
    def _full():
        accumulate(masked=False)

    @pl.when(jnp.logical_and(rows_here > 0, rows_here < block_rows))
    def _partial():                          # partial last block only
        accumulate(masked=True)
    # rows_here <= 0: overflow iteration from the uneven 2-core split -> skip.


def _r2_raw(preds2d, labels2d):
    """preds/labels: (N, O) in native dtype.  Returns raw per-output R2, (O,) f32."""
    n, o = preds2d.shape
    k = _LANES // o if o < _LANES else 1     # samples packed per lane row
    lanes = k * o
    group = 8 * k                            # samples per 8-row sublane group
    n_pad = _round_up(n, group)
    if n_pad != n:                           # zero rows contribute 0 to all sums
        preds2d = jnp.pad(preds2d, ((0, n_pad - n), (0, 0)))
        labels2d = jnp.pad(labels2d, ((0, n_pad - n), (0, 0)))
    rows = n_pad // k
    preds_r = preds2d.reshape(rows, lanes)   # contiguous -> free reshape in HBM
    labels_r = labels2d.reshape(rows, lanes)

    tr = _choose_block_rows(rows, lanes, preds_r.dtype.itemsize)
    num_blocks = (rows + tr - 1) // tr
    num_cores = _NUM_CORES if num_blocks >= 2 else 1
    bpc = (num_blocks + num_cores - 1) // num_cores   # row-blocks per core

    def in_map(c, i):                        # clamp the (<=1) overflow block
        return (jnp.minimum(c * bpc + i, num_blocks - 1), 0)

    kernel = functools.partial(_r2_sums_kernel, total_rows=rows)
    out = pl.pallas_call(
        kernel,
        out_shape=jax.ShapeDtypeStruct((num_cores * 3, 8, lanes), jnp.float32),
        grid_spec=pltpu.PrefetchScalarGridSpec(
            num_scalar_prefetch=0,
            grid=(num_cores, bpc),
            in_specs=[pl.BlockSpec((tr, lanes), in_map),
                      pl.BlockSpec((tr, lanes), in_map)],
            out_specs=pl.BlockSpec((3, 8, lanes), lambda c, i: (c, 0, 0)),
        ),
        compiler_params=pltpu.CompilerParams(
            dimension_semantics=("parallel", "arbitrary")),
    )(preds_r, labels_r)

    # Tiny epilogue in plain JAX: fold cores, sublanes and the k lane-groups.
    sums = out.reshape(num_cores, 3, 8, lanes).sum(axis=(0, 2))   # (3, lanes)
    sy, sy2, se = jnp.sum(sums.reshape(3, k, o), axis=1)          # 3 x (O,)
    n_f = jnp.asarray(n, jnp.float32)
    tss = sy2 - sy * (sy / n_f)
    return 1.0 - se / tss


def metric_r2(inputs, labels, reduction="mean", force_finite=False):
    """Mirrors Metric_R2.forward (reduction 'mean'/'none', optional force_finite)."""
    reduction = reduction.lower()
    if reduction not in ("mean", "none"):
        raise ValueError()

    inputs = jnp.asarray(inputs)
    labels = jnp.asarray(labels)

    # Flatten path from the PyTorch module: 2-D with a singleton dim.
    if inputs.ndim == 2 and (inputs.shape[0] == 1 or inputs.shape[1] == 1):
        inputs = inputs.reshape(-1)
        labels = labels.reshape(-1)

    if inputs.ndim == 1:
        score = _r2_raw(inputs.reshape(-1, 1), labels.reshape(-1, 1))[0]
    else:
        raw = _r2_raw(inputs, labels)
        score = jnp.mean(raw) if reduction == "mean" else raw

    if force_finite:
        score = jnp.nan_to_num(score, nan=1.0, posinf=0.0, neginf=0.0)
    return score


if __name__ == "__main__":
    key = jax.random.PRNGKey(0)
    k1, k2, k3, k4, k5, k6, k7, k8 = jax.random.split(key, 8)

    def ref_r2(p, y):
        p = p.astype(jnp.float32)
        y = y.astype(jnp.float32)
        tss = jnp.sum(y * y, axis=0) - jnp.sum(y, axis=0) * jnp.mean(y, axis=0)
        rss = jnp.sum((y - p) ** 2, axis=0)
        return 1.0 - rss / tss

    # Case 1: default module config (output_size=1, reduction='mean'), N=256.
    labels = jax.random.normal(k1, (256, 1), dtype=jnp.float32)
    inputs = labels + 0.1 * jax.random.normal(k2, (256, 1), dtype=jnp.float32)
    score = jax.block_until_ready(metric_r2(inputs, labels, reduction="mean"))
    ref = ref_r2(inputs.reshape(-1), labels.reshape(-1))
    assert jnp.allclose(score, ref, rtol=1e-5, atol=1e-5), (score, ref)

    # Case 2: N not a multiple of 128 + bf16 inputs (native-dtype HBM read).
    labels2 = jax.random.normal(k3, (300, 1), dtype=jnp.float32)
    inputs2 = labels2 + 0.2 * jax.random.normal(k4, (300, 1), dtype=jnp.float32)
    score2 = jax.block_until_ready(
        metric_r2(inputs2.astype(jnp.bfloat16), labels2.astype(jnp.bfloat16),
                  reduction="mean"))
    ref2 = ref_r2(inputs2.astype(jnp.bfloat16).reshape(-1),
                  labels2.astype(jnp.bfloat16).reshape(-1))
    assert jnp.allclose(score2, ref2, rtol=1e-4, atol=1e-4), (score2, ref2)

    # Case 3: multi-output (N=64, O=4), reduction='none' (lane-repacked path).
    labels3 = jax.random.normal(k5, (64, 4), dtype=jnp.float32)
    inputs3 = labels3 + 0.3 * jax.random.normal(k6, (64, 4), dtype=jnp.float32)
    raw3 = jax.block_until_ready(metric_r2(inputs3, labels3, reduction="none"))
    ref3 = ref_r2(inputs3, labels3)
    assert jnp.allclose(raw3, ref3, rtol=1e-5, atol=1e-5), (raw3, ref3)

    # Case 4: larger single-output stream exercising the 2-core split, the
    # multi-block grid and the masked partial last block (N=40000).
    labels4 = jax.random.normal(k7, (40000, 1), dtype=jnp.float32)
    inputs4 = labels4 + 0.1 * jax.random.normal(k8, (40000, 1), dtype=jnp.float32)
    score4 = jax.block_until_ready(metric_r2(inputs4, labels4, reduction="mean"))
    ref4 = ref_r2(inputs4.reshape(-1), labels4.reshape(-1))
    assert jnp.allclose(score4, ref4, rtol=1e-4, atol=1e-4), (score4, ref4)

    print("KERNEL_OK")
</pallas_src>

<mosaic_0001>
module attributes {stable_mosaic.version = 11 : i64} {
  func.func @_r2_sums_kernel(%arg0: i32, %arg1: i32, %arg2: memref<8x128xf32, #tpu.memory_space<vmem>>, %arg3: memref<8x128xf32, #tpu.memory_space<vmem>>, %arg4: memref<3x8x128xf32, #tpu.memory_space<vmem>>) attributes {dimension_semantics = [#tpu.dimension_semantics<parallel>, #tpu.dimension_semantics<arbitrary>], iteration_bounds = array<i64: 1, 1>, scalar_prefetch = 0 : i64, scratch_operands = 0 : i64, tpu.core_type = #tpu.core_type<tc>, window_params = [{transform_indices = @transform_0, window_bounds = array<i64: 8, 128>}, {transform_indices = @transform_1, window_bounds = array<i64: 8, 128>}, {transform_indices = @transform_2, window_bounds = array<i64: 3, 8, 128>}]} {
    %c0_i32 = arith.constant 0 : i32
    %0 = arith.cmpi eq, %arg1, %c0_i32 : i32
    %1 = arith.extui %0 : i1 to i32
    %c0_i32_0 = arith.constant 0 : i32
    %2 = arith.cmpi ne, %1, %c0_i32_0 : i32
    scf.if %2 {
      %cst = arith.constant 0.000000e+00 : f32
      %15 = vector.broadcast %cst : f32 to vector<3x8x128xf32>
      %c0 = arith.constant 0 : index
      %c0_7 = arith.constant 0 : index
      %c0_8 = arith.constant 0 : index
      %16 = vector.load %arg4[%c0, %c0_7, %c0_8] : memref<3x8x128xf32, #tpu.memory_space<vmem>>, vector<3x8x128xf32>
      tpu.vector_store %arg4[%c0, %c0_7, %c0_8], %15 {strides = array<i32>} : memref<3x8x128xf32, #tpu.memory_space<vmem>>, vector<3x8x128xf32>,
    } else {
    }
    %c1_i32 = arith.constant 1 : i32
    %3 = arith.muli %arg0, %c1_i32 : i32
    %4 = arith.addi %3, %arg1 : i32
    %c8_i32 = arith.constant 8 : i32
    %5 = arith.muli %4, %c8_i32 : i32
    %c8_i32_1 = arith.constant 8 : i32
    %6 = arith.subi %c8_i32_1, %5 : i32
    %c8_i32_2 = arith.constant 8 : i32
    %7 = arith.cmpi sge, %6, %c8_i32_2 : i32
    %8 = arith.extui %7 : i1 to i32
    %c0_i32_3 = arith.constant 0 : i32
    %9 = arith.cmpi ne, %8, %c0_i32_3 : i32
    scf.if %9 {
      %cst = arith.constant 0.000000e+00 : f32
      %15 = vector.broadcast %cst : f32 to vector<8x128xf32>
      %c0_i32_7 = arith.constant 0 : i32
      %c8_i32_8 = arith.constant 8 : i32
      %16 = arith.muli %c0_i32_7, %c8_i32_8 : i32
      %17 = tpu.assume_multiple %16, 8 : i32
      %18 = arith.index_cast %17 : i32 to index
      %c0 = arith.constant 0 : index
      %19 = vector.load %arg3[%18, %c0] : memref<8x128xf32, #tpu.memory_space<vmem>>, vector<8x128xf32>
      %20 = arith.index_cast %17 : i32 to index
      %c0_9 = arith.constant 0 : index
      %21 = vector.load %arg2[%20, %c0_9] : memref<8x128xf32, #tpu.memory_space<vmem>>, vector<8x128xf32>
      %22 = arith.subf %19, %21 : vector<8x128xf32>
      %23 = arith.addf %15, %19 : vector<8x128xf32>
      %24 = arith.mulf %19, %19 : vector<8x128xf32>
      %25 = arith.addf %15, %24 : vector<8x128xf32>
      %26 = arith.mulf %22, %22 : vector<8x128xf32>
      %27 = arith.addf %15, %26 : vector<8x128xf32>
      %c1_i32_10 = arith.constant 1 : i32
      %c0_11 = arith.constant 0 : index
      %c0_12 = arith.constant 0 : index
      %c0_13 = arith.constant 0 : index
      %28 = vector.load %arg4[%c0_11, %c0_12, %c0_13] : memref<3x8x128xf32, #tpu.memory_space<vmem>>, vector<1x8x128xf32>
      %29 = vector.shape_cast %28 : vector<1x8x128xf32> to vector<8x128xf32>
      %30 = arith.addf %29, %23 : vector<8x128xf32>
      %c0_14 = arith.constant 0 : index
      %c0_15 = arith.constant 0 : index
      %c0_16 = arith.constant 0 : index
      %31 = vector.load %arg4[%c0_14, %c0_15, %c0_16] : memref<3x8x128xf32, #tpu.memory_space<vmem>>, vector<1x8x128xf32>
      %32 = vector.shape_cast %31 : vector<1x8x128xf32> to vector<8x128xf32>
      %33 = vector.shape_cast %30 : vector<8x128xf32> to vector<1x8x128xf32>
      tpu.vector_store %arg4[%c0_14, %c0_15, %c0_16], %33 {strides = array<i32>} : memref<3x8x128xf32, #tpu.memory_space<vmem>>, vector<1x8x128xf32>,
      %c1 = arith.constant 1 : index
      %c0_17 = arith.constant 0 : index
      %c0_18 = arith.constant 0 : index
      %34 = vector.load %arg4[%c1, %c0_17, %c0_18] : memref<3x8x128xf32, #tpu.memory_space<vmem>>, vector<1x8x128xf32>
      %35 = vector.shape_cast %34 : vector<1x8x128xf32> to vector<8x128xf32>
      %36 = arith.addf %35, %25 : vector<8x128xf32>
      %c1_19 = arith.constant 1 : index
      %c0_20 = arith.constant 0 : index
      %c0_21 = arith.constant 0 : index
      %37 = vector.load %arg4[%c1_19, %c0_20, %c0_21] : memref<3x8x128xf32, #tpu.memory_space<vmem>>, vector<1x8x128xf32>
      %38 = vector.shape_cast %37 : vector<1x8x128xf32> to vector<8x128xf32>
      %39 = vector.shape_cast %36 : vector<8x128xf32> to vector<1x8x128xf32>
      tpu.vector_store %arg4[%c1_19, %c0_20, %c0_21], %39 {strides = array<i32>} : memref<3x8x128xf32, #tpu.memory_space<vmem>>, vector<1x8x128xf32>,
      %c2 = arith.constant 2 : index
      %c0_22 = arith.constant 0 : index
      %c0_23 = arith.constant 0 : index
      %40 = vector.load %arg4[%c2, %c0_22, %c0_23] : memref<3x8x128xf32, #tpu.memory_space<vmem>>, vector<1x8x128xf32>
      %41 = vector.shape_cast %40 : vector<1x8x128xf32> to vector<8x128xf32>
      %42 = arith.addf %41, %27 : vector<8x128xf32>
      %c2_24 = arith.constant 2 : index
      %c0_25 = arith.constant 0 : index
      %c0_26 = arith.constant 0 : index
      %43 = vector.load %arg4[%c2_24, %c0_25, %c0_26] : memref<3x8x128xf32, #tpu.memory_space<vmem>>, vector<1x8x128xf32>
      %44 = vector.shape_cast %43 : vector<1x8x128xf32> to vector<8x128xf32>
      %45 = vector.shape_cast %42 : vector<8x128xf32> to vector<1x8x128xf32>
      tpu.vector_store %arg4[%c2_24, %c0_25, %c0_26], %45 {strides = array<i32>} : memref<3x8x128xf32, #tpu.memory_space<vmem>>, vector<1x8x128xf32>,
    } else {
    }
    %c0_i32_4 = arith.constant 0 : i32
    %10 = arith.cmpi sgt, %6, %c0_i32_4 : i32
    %c8_i32_5 = arith.constant 8 : i32
    %11 = arith.cmpi slt, %6, %c8_i32_5 : i32
    %12 = arith.andi %10, %11 : i1
    %13 = arith.extui %12 : i1 to i32
    %c0_i32_6 = arith.constant 0 : i32
    %14 = arith.cmpi ne, %13, %c0_i32_6 : i32
    scf.if %14 {
      %cst = arith.constant 0.000000e+00 : f32
      %15 = vector.broadcast %cst : f32 to vector<8x128xf32>
      %c0_i32_7 = arith.constant 0 : i32
      %c8_i32_8 = arith.constant 8 : i32
      %16 = arith.muli %c0_i32_7, %c8_i32_8 : i32
      %17 = tpu.assume_multiple %16, 8 : i32
      %18 = arith.index_cast %17 : i32 to index
      %c0 = arith.constant 0 : index
      %19 = vector.load %arg3[%18, %c0] : memref<8x128xf32, #tpu.memory_space<vmem>>, vector<8x128xf32>
      %20 = arith.index_cast %17 : i32 to index
      %c0_9 = arith.constant 0 : index
      %21 = vector.load %arg2[%20, %c0_9] : memref<8x128xf32, #tpu.memory_space<vmem>>, vector<8x128xf32>
      %22 = tpu.iota {dimensions = array<i32: 0>} : vector<8x128xi32>
      %23 = vector.broadcast %17 : i32 to vector<8x128xi32>
      %24 = arith.addi %23, %22 : vector<8x128xi32>
      %25 = vector.broadcast %6 : i32 to vector<8x128xi32>
      %26 = arith.cmpi slt, %24, %25 : vector<8x128xi32>
      %cst_10 = arith.constant 0.000000e+00 : f32
      %27 = vector.broadcast %cst_10 : f32 to vector<8x128xf32>
      %28 = arith.select %26, %19, %27 : vector<8x128xi1>, vector<8x128xf32>
      %29 = arith.select %26, %21, %27 : vector<8x128xi1>, vector<8x128xf32>
      %30 = arith.subf %28, %29 : vector<8x128xf32>
      %31 = arith.addf %15, %28 : vector<8x128xf32>
      %32 = arith.mulf %28, %28 : vector<8x128xf32>
      %33 = arith.addf %15, %32 : vector<8x128xf32>
      %34 = arith.mulf %30, %30 : vector<8x128xf32>
      %35 = arith.addf %15, %34 : vector<8x128xf32>
      %c1_i32_11 = arith.constant 1 : i32
      %c0_12 = arith.constant 0 : index
      %c0_13 = arith.constant 0 : index
      %c0_14 = arith.constant 0 : index
      %36 = vector.load %arg4[%c0_12, %c0_13, %c0_14] : memref<3x8x128xf32, #tpu.memory_space<vmem>>, vector<1x8x128xf32>
      %37 = vector.shape_cast %36 : vector<1x8x128xf32> to vector<8x128xf32>
      %38 = arith.addf %37, %31 : vector<8x128xf32>
      %c0_15 = arith.constant 0 : index
      %c0_16 = arith.constant 0 : index
      %c0_17 = arith.constant 0 : index
      %39 = vector.load %arg4[%c0_15, %c0_16, %c0_17] : memref<3x8x128xf32, #tpu.memory_space<vmem>>, vector<1x8x128xf32>
      %40 = vector.shape_cast %39 : vector<1x8x128xf32> to vector<8x128xf32>
      %41 = vector.shape_cast %38 : vector<8x128xf32> to vector<1x8x128xf32>
      tpu.vector_store %arg4[%c0_15, %c0_16, %c0_17], %41 {strides = array<i32>} : memref<3x8x128xf32, #tpu.memory_space<vmem>>, vector<1x8x128xf32>,
      %c1 = arith.constant 1 : index
      %c0_18 = arith.constant 0 : index
      %c0_19 = arith.constant 0 : index
      %42 = vector.load %arg4[%c1, %c0_18, %c0_19] : memref<3x8x128xf32, #tpu.memory_space<vmem>>, vector<1x8x128xf32>
      %43 = vector.shape_cast %42 : vector<1x8x128xf32> to vector<8x128xf32>
      %44 = arith.addf %43, %33 : vector<8x128xf32>
      %c1_20 = arith.constant 1 : index
      %c0_21 = arith.constant 0 : index
      %c0_22 = arith.constant 0 : index
      %45 = vector.load %arg4[%c1_20, %c0_21, %c0_22] : memref<3x8x128xf32, #tpu.memory_space<vmem>>, vector<1x8x128xf32>
      %46 = vector.shape_cast %45 : vector<1x8x128xf32> to vector<8x128xf32>
      %47 = vector.shape_cast %44 : vector<8x128xf32> to vector<1x8x128xf32>
      tpu.vector_store %arg4[%c1_20, %c0_21, %c0_22], %47 {strides = array<i32>} : memref<3x8x128xf32, #tpu.memory_space<vmem>>, vector<1x8x128xf32>,
      %c2 = arith.constant 2 : index
      %c0_23 = arith.constant 0 : index
      %c0_24 = arith.constant 0 : index
      %48 = vector.load %arg4[%c2, %c0_23, %c0_24] : memref<3x8x128xf32, #tpu.memory_space<vmem>>, vector<1x8x128xf32>
      %49 = vector.shape_cast %48 : vector<1x8x128xf32> to vector<8x128xf32>
      %50 = arith.addf %49, %35 : vector<8x128xf32>
      %c2_25 = arith.constant 2 : index
      %c0_26 = arith.constant 0 : index
      %c0_27 = arith.constant 0 : index
      %51 = vector.load %arg4[%c2_25, %c0_26, %c0_27] : memref<3x8x128xf32, #tpu.memory_space<vmem>>, vector<1x8x128xf32>
      %52 = vector.shape_cast %51 : vector<1x8x128xf32> to vector<8x128xf32>
      %53 = vector.shape_cast %50 : vector<8x128xf32> to vector<1x8x128xf32>
      tpu.vector_store %arg4[%c2_25, %c0_26, %c0_27], %53 {strides = array<i32>} : memref<3x8x128xf32, #tpu.memory_space<vmem>>, vector<1x8x128xf32>,
    } else {
    }
    return
  }
  func.func @transform_0(%arg0: i32, %arg1: i32) -> (i32, i32) {
    %c1_i32 = arith.constant 1 : i32
    %0 = arith.muli %arg0, %c1_i32 : i32
    %1 = arith.addi %0, %arg1 : i32
    %c0_i32 = arith.constant 0 : i32
    %2 = arith.minsi %1, %c0_i32 : i32
    %c0_i32_0 = arith.constant 0 : i32
    %c0_i32_1 = arith.constant 0 : i32
    return %2, %c0_i32_0 : i32, i32
  }
  func.func @transform_1(%arg0: i32, %arg1: i32) -> (i32, i32) {
    %c1_i32 = arith.constant 1 : i32
    %0 = arith.muli %arg0, %c1_i32 : i32
    %1 = arith.addi %0, %arg1 : i32
    %c0_i32 = arith.constant 0 : i32
    %2 = arith.minsi %1, %c0_i32 : i32
    %c0_i32_0 = arith.constant 0 : i32
    %c0_i32_1 = arith.constant 0 : i32
    return %2, %c0_i32_0 : i32, i32
  }
  func.func @transform_2(%arg0: i32, %arg1: i32) -> (i32, i32, i32) {
    %c0_i32 = arith.constant 0 : i32
    %c0_i32_0 = arith.constant 0 : i32
    %c0_i32_1 = arith.constant 0 : i32
    return %arg0, %c0_i32, %c0_i32_0 : i32, i32, i32
  }
}

</mosaic_0001>

<bundles_post_ra>
// kernel: tpu_custom_call.1
= control target key start
LH: loop header
LB: loop body
LE: loop exit
PB: predicated region body
PF: predicated region fallthrough
CT: control target
= control target key end

     0   :  { %7 = vsyncpa [#allocation3], 0  ;;  %s274_s0 = inlined_call_operand.hbm [shape: f32[8,128], index: 0, kind: input, shape index: {}]   ;;  %s275_s1 = inlined_call_operand.hbm [shape: f32[8,128], index: 1, kind: input, shape index: {}]   ;;  %s276_s2 = inlined_call_operand.hbm [shape: f32[3,8,128], index: 2, kind: output, shape index: {}]  }
   0x1   :  { %8 = vsyncpa [#allocation6], 0 }
   0x2   :  { %9 = vsyncpa [#allocation4], 0  ;;  %s218_s9 = smov [#allocation2]   ;;  %s219_s11 = smov [#allocation5]  }
   0x3   :  { %s21_s10 = sshll.u32 %s218_s9, 4  ;;  %s36_s12 = sshll.u32 %s219_s11, 4  ;;  %s22_s10 = int_to_ptr.vmem [resolvable:$true] %s21_s10  ;;  %s37_s12 = int_to_ptr.vmem [resolvable:$true] %s36_s12 }
   0x4   :  { %s146_s15 = scalar_lea.hbm %s274_s0, 128 }
   0x5   :  { %p147_p0 = scmp.ne.s32.totalorder %s274_s0, %s146_s15  ;;  %p150_p1 = scmp.lt.u32.totalorder %s146_s15, %s274_s0 }
   0x7   :  { %p152_p2 = pnand %p150_p1, %p147_p0 }
   0x9   :  { %155 = shalt.err (!%p152_p2)
}
   0xa   :  { %s156_s20 = scalar_lea.vmem %s22_s10, 128  ;;  %p161_p4 = scmp.lt.s32.totalorder %s22_s10, %s22_s10 }
   0xb   :  { %p157_p3 = scmp.ne.s32.totalorder %s22_s10, %s156_s20  ;;  %p162_p5 = scmp.lt.s32.totalorder %s156_s20, %s156_s20 }
   0xd   :  { %p163_p6 = por %p162_p5, %p161_p4 }
   0xf   :  { %p164_p7 = pnand %p163_p6, %p157_p3 }
  0x11   :  { %167 = shalt.err (!%p164_p7)
}
  0x12   :  { %24 = dma.hbm_to_vmem [thread:$0]  %s274_s0, 128, %s22_s10, [#allocation3]  }
  0x13   :  { %s168_s25 = scalar_lea.hbm %s275_s1, 128 }
  0x14   :  { %p169_p8 = scmp.ne.s32.totalorder %s275_s1, %s168_s25  ;;  %p172_p9 = scmp.lt.u32.totalorder %s168_s25, %s275_s1 }
  0x16   :  { %p174_p10 = pnand %p172_p9, %p169_p8 }
  0x18   :  { %177 = shalt.err (!%p174_p10)
}
  0x19   :  { %s178_s30 = scalar_lea.vmem %s37_s12, 128  ;;  %p183_p12 = scmp.lt.s32.totalorder %s37_s12, %s37_s12 }
  0x1a   :  { %p179_p11 = scmp.ne.s32.totalorder %s37_s12, %s178_s30  ;;  %p184_p13 = scmp.lt.s32.totalorder %s178_s30, %s178_s30 }
  0x1c   :  { %p185_p0 = por %p184_p13, %p183_p12 }
  0x1e   :  { %p186_p1 = pnand %p185_p0, %p179_p11 }
  0x20   :  { %189 = shalt.err (!%p186_p1)
}
  0x21   :  { %39 = dma.hbm_to_vmem [thread:$0]  %s275_s1, 128, %s37_s12, [#allocation6]  }
  0x22   :  { %212 = dma.done.wait [#allocation3], 128  }
  0x23   :  { %213 = vsyncadd [#allocation3], 4294967168 }
  0x24   :  { %214 = dma.done.wait [#allocation6], 128  }
  0x25   :  { %215 = vsyncadd [#allocation6], 4294967168  ;;  %v66_v0 = vld [vmem:[#allocation5] sm:$0xff]  ;;  %v67_v1 = vld [vmem:[#allocation2] sm:$0xff]  ;;  %s220_s4 = smov [#allocation7]  }
  0x26   :  { %v70_v2 = vmul.f32 %v66_v0, %v66_v0  ;;  %v68_v3 = vsub.f32 %v66_v0, %v67_v1  ;;  %s123_s5 = sshll.u32 %s220_s4, 4  ;;  %76 = vst [vmem:[#allocation7] sm:$0xff] %v66_v0  ;;  %s124_s5 = int_to_ptr.vmem [resolvable:$true] %s123_s5 }
  0x27   :  { %s190_s6 = scalar_lea.vmem %s124_s5, 384  ;;  %p195_p3 = scmp.lt.s32.totalorder %s124_s5, %s124_s5 }
  0x28   :  { %v72_v4 = vmul.f32 %v68_v3, %v68_v3  ;;  %80 = vst [vmem:[#allocation7 + $0x8] sm:$0xff] %v70_v2  ;;  %p191_p2 = scmp.ne.s32.totalorder %s124_s5, %s190_s6  ;;  %p196_p4 = scmp.lt.s32.totalorder %s190_s6, %s190_s6 }
  0x2a   :  { %84 = vst [vmem:[#allocation7 + $0x10] sm:$0xff] %v72_v4  ;;  %p197_p5 = por %p196_p4, %p195_p3 }
  0x2c   :  { %p198_p6 = pnand %p197_p5, %p191_p2 }
  0x2e   :  { %201 = shalt.err (!%p198_p6)
}
  0x2f   :  { %s202_s8 = scalar_lea.hbm %s276_s2, 384 }
  0x30   :  { %p203_p7 = scmp.ne.s32.totalorder %s276_s2, %s202_s8  ;;  %p206_p8 = scmp.lt.u32.totalorder %s202_s8, %s276_s2 }
  0x32   :  { %p208_p9 = pnand %p206_p8, %p203_p7 }
  0x34   :  { %211 = shalt.err (!%p208_p9)
}
  0x35   :  { %s221_s13 = smov 128   ;;  %s222_s14 = smov 8  }
  0x36   :  { %129 = dma.vmem_to_hbm [thread:$0]  %s124_s5, 384, %s276_s2, [#allocation4], %s221_s13, %s221_s13, %s222_s14  }
  0x37   :  { %216 = dma.done.wait [#allocation4], 384  }
  0x38   :  { %217 = vsyncadd [#allocation4], 4294966912 }
  0x39   :  { %133 = vsyncpa [#allocation3], 1 }
  0x3a   :  { %134 = vsyncpa [#allocation6], 1 }
  0x3b   :  { %135 = vsyncpa [#allocation4], 1 }

</bundles_post_ra>
